<compile_context>
chip_gen: v6e
topology: v6e:2x2x1
jax: 0.10.0
libtpu: 0.0.40
codegen_flags: <defaults>
</compile_context>

<pallas_src>
import jax
import jax.numpy as jnp
from jax.experimental import pallas as pl
from jax.experimental.pallas import tpu as pltpu


_SUB = 8      # sublanes per vreg
_LANE = 128   # lanes per vreg


def _cdiv(a: int, b: int) -> int:
    return -(-a // b)


def _gp_kernel(g_ref, out_ref):
    """Accumulate per-block sum of squares into an (1, 8, TL) resident accumulator."""
    k = pl.program_id(1)

    @pl.when(k == 0)
    def _():
        out_ref[...] = jnp.zeros_like(out_ref)

    g = g_ref[...].astype(jnp.float32)          # (tr//8, 8, TL), cast in-register
    out_ref[...] += jnp.sum(g * g, axis=0, keepdims=True)   # VPU adds over major axis


def gradient_penalty_from_grads(grads: jax.Array) -> jax.Array:
    """mean over batch of squared L2 norm of per-sample gradients (Pallas reduction)."""
    batch = grads.shape[0]
    n = grads.size
    itemsize = jnp.dtype(grads.dtype).itemsize

    # ---- tiling choices -------------------------------------------------------
    # Lane width of the flattened 2-D view.
    tl = 1024 if n >= 1024 else _LANE
    # Rows of `tl` lanes, rounded up to a sublane multiple.
    rows = _cdiv(n, tl)
    rows = _cdiv(rows, _SUB) * _SUB
    # Rows per block: multiple of 8, capped so one buffer is <= ~4 MiB
    # (2x double-buffered input stays well under v7x's VMEM budget).
    max_block_bytes = 4 * 1024 * 1024
    max_tr = max(_SUB, (max_block_bytes // (tl * itemsize)) // _SUB * _SUB)
    tr = min(max_tr, rows)
    nb = _cdiv(rows, tr)                 # total row-blocks
    num_par = 2 if nb >= 2 else 1        # split across the 2 TCs on v7x
    nk = _cdiv(nb, num_par)              # reduction steps per parallel slice
    total_rows = num_par * nk * tr

    # ---- lay the gradient out lane/sublane-dense ------------------------------
    flat = grads.reshape(-1)             # native dtype: no extra HBM copy for cast
    pad = total_rows * tl - n
    if pad:
        flat = jnp.pad(flat, (0, pad))   # zeros do not change the sum of squares
    g3 = flat.reshape(total_rows // _SUB, _SUB, tl)

    sub_blocks = tr // _SUB              # leading block dim (vreg-rows per block)

    partials = pl.pallas_call(
        _gp_kernel,
        out_shape=jax.ShapeDtypeStruct((num_par, _SUB, tl), jnp.float32),
        grid_spec=pltpu.PrefetchScalarGridSpec(
            num_scalar_prefetch=0,
            grid=(num_par, nk),
            in_specs=[
                pl.BlockSpec((sub_blocks, _SUB, tl),
                             lambda p, k: (p * nk + k, 0, 0)),
            ],
            out_specs=pl.BlockSpec((1, _SUB, tl), lambda p, k: (p, 0, 0)),
        ),
        compiler_params=pltpu.CompilerParams(
            dimension_semantics=("parallel", "arbitrary"),
            vmem_limit_bytes=32 * 1024 * 1024,
        ),
    )(g3)

    # Tiny final combine of the per-core partial accumulators + mean over batch.
    return jnp.sum(partials) / batch


def gradient_penalty(x: jax.Array, critic_fn) -> jax.Array:
    """Full GradientPenalty.forward: autodiff pullback (glue) + Pallas reduction."""
    d, vjp_fn = jax.vjp(critic_fn, x)
    (grads,) = vjp_fn(jnp.ones_like(d))      # == torch.autograd.grad(d, x, ones)
    return gradient_penalty_from_grads(grads)


if __name__ == "__main__":
    key = jax.random.PRNGKey(0)
    kx, kw = jax.random.split(key)

    # x: NCHW, small shapes.
    B, C, H, W = 2, 4, 16, 16
    x = jax.random.normal(kx, (B, C, H, W), dtype=jnp.float32)

    # Deterministic synthetic "discriminator": 1x1 conv (per-channel weights)
    # followed by tanh, so d carries a differentiable dependence on x.
    w = jax.random.normal(kw, (1, C, 1, 1), dtype=jnp.float32) * 0.1

    def critic_fn(inp):
        return jnp.tanh(jnp.sum(inp * w, axis=1, keepdims=True))  # (B,1,H,W)

    result = jax.jit(lambda xx: gradient_penalty(xx, critic_fn))(x)
    jax.block_until_ready(result)

    # Pure-JAX reference check of the Pallas reduction.
    d_ref, vjp_ref = jax.vjp(critic_fn, x)
    (g_ref,) = vjp_ref(jnp.ones_like(d_ref))
    ref = jnp.mean(jnp.sum(g_ref.reshape(B, -1) ** 2, axis=1))
    assert jnp.allclose(result, ref, rtol=1e-5, atol=1e-5), (result, ref)

    print("KERNEL_OK")
</pallas_src>

<mosaic_0001>
module attributes {stable_mosaic.version = 11 : i64} {
  func.func @_gp_kernel(%arg0: i32, %arg1: i32, %arg2: memref<1x8x1024xf32, #tpu.memory_space<vmem>>, %arg3: memref<1x8x1024xf32, #tpu.memory_space<vmem>>) attributes {dimension_semantics = [#tpu.dimension_semantics<parallel>, #tpu.dimension_semantics<arbitrary>], iteration_bounds = array<i64: 1, 1>, scalar_prefetch = 0 : i64, scratch_operands = 0 : i64, tpu.core_type = #tpu.core_type<tc>, window_params = [{transform_indices = @transform_0, window_bounds = array<i64: 1, 8, 1024>}, {transform_indices = @transform_1, window_bounds = array<i64: 1, 8, 1024>}]} {
    %c0_i32 = arith.constant 0 : i32
    %0 = arith.cmpi eq, %arg1, %c0_i32 : i32
    %1 = arith.extui %0 : i1 to i32
    %c0_i32_0 = arith.constant 0 : i32
    %2 = arith.cmpi ne, %1, %c0_i32_0 : i32
    scf.if %2 {
      %cst_9 = arith.constant 0.000000e+00 : f32
      %10 = vector.broadcast %cst_9 : f32 to vector<1x8x1024xf32>
      %c0_10 = arith.constant 0 : index
      %c0_11 = arith.constant 0 : index
      %c0_12 = arith.constant 0 : index
      %11 = vector.load %arg3[%c0_10, %c0_11, %c0_12] : memref<1x8x1024xf32, #tpu.memory_space<vmem>>, vector<1x8x1024xf32>
      tpu.vector_store %arg3[%c0_10, %c0_11, %c0_12], %10 {strides = array<i32>} : memref<1x8x1024xf32, #tpu.memory_space<vmem>>, vector<1x8x1024xf32>,
    } else {
    }
    %c0 = arith.constant 0 : index
    %c0_1 = arith.constant 0 : index
    %c0_2 = arith.constant 0 : index
    %3 = vector.load %arg2[%c0, %c0_1, %c0_2] : memref<1x8x1024xf32, #tpu.memory_space<vmem>>, vector<1x8x1024xf32>
    %c0_3 = arith.constant 0 : index
    %c0_4 = arith.constant 0 : index
    %c0_5 = arith.constant 0 : index
    %4 = vector.load %arg3[%c0_3, %c0_4, %c0_5] : memref<1x8x1024xf32, #tpu.memory_space<vmem>>, vector<1x8x1024xf32>
    %5 = arith.mulf %3, %3 : vector<1x8x1024xf32>
    %cst = arith.constant dense<0.000000e+00> : vector<8x1024xf32>
    %6 = vector.multi_reduction <add>, %5, %cst [0] : vector<1x8x1024xf32> to vector<8x1024xf32>
    %7 = vector.shape_cast %6 : vector<8x1024xf32> to vector<1x8x1024xf32>
    %8 = arith.addf %4, %7 : vector<1x8x1024xf32>
    %c0_6 = arith.constant 0 : index
    %c0_7 = arith.constant 0 : index
    %c0_8 = arith.constant 0 : index
    %9 = vector.load %arg3[%c0_6, %c0_7, %c0_8] : memref<1x8x1024xf32, #tpu.memory_space<vmem>>, vector<1x8x1024xf32>
    tpu.vector_store %arg3[%c0_6, %c0_7, %c0_8], %8 {strides = array<i32>} : memref<1x8x1024xf32, #tpu.memory_space<vmem>>, vector<1x8x1024xf32>,
    return
  }
  func.func @transform_0(%arg0: i32, %arg1: i32) -> (i32, i32, i32) {
    %c1_i32 = arith.constant 1 : i32
    %0 = arith.muli %arg0, %c1_i32 : i32
    %1 = arith.addi %0, %arg1 : i32
    %c0_i32 = arith.constant 0 : i32
    %c0_i32_0 = arith.constant 0 : i32
    %c0_i32_1 = arith.constant 0 : i32
    return %1, %c0_i32, %c0_i32_0 : i32, i32, i32
  }
  func.func @transform_1(%arg0: i32, %arg1: i32) -> (i32, i32, i32) {
    %c0_i32 = arith.constant 0 : i32
    %c0_i32_0 = arith.constant 0 : i32
    %c0_i32_1 = arith.constant 0 : i32
    return %arg0, %c0_i32, %c0_i32_0 : i32, i32, i32
  }
}

</mosaic_0001>

<bundles_post_ra>
// kernel: _lambda_.1
= control target key start
LH: loop header
LB: loop body
LE: loop exit
PB: predicated region body
PF: predicated region fallthrough
CT: control target
= control target key end

     0   :  { %s157_s0 = inlined_call_operand.vmem [shape: f32[1,8,1024], index: 0, kind: input, shape index: {}]   ;;  %s158_s1 = inlined_call_operand.vmem [shape: f32[1,8,1024], index: 1, kind: output, shape index: {}]  }
   0x1   :  { %v40_v0 = vld [vmem:[%s157_s0] sm:$0xff]  ;;  %v41_v1 = vld [vmem:[%s157_s0 + $0x8] sm:$0xff]  ;;  %v42_v2 = vld [vmem:[%s157_s0 + $0x10] sm:$0xff] }
   0x2   :  { %v56_v3 = vmul.f32 %v40_v0, %v40_v0  ;;  %v57_v4 = vmul.f32 %v41_v1, %v41_v1  ;;  %v58_v5 = vmul.f32 %v42_v2, %v42_v2  ;;  %v43_v6 = vld [vmem:[%s157_s0 + $0x18] sm:$0xff]  ;;  %v44_v7 = vld [vmem:[%s157_s0 + $0x20] sm:$0xff]  ;;  %v45_v8 = vld [vmem:[%s157_s0 + $0x28] sm:$0xff] }
   0x3   :  { %v59_v9 = vmul.f32 %v43_v6, %v43_v6  ;;  %v60_v10 = vmul.f32 %v44_v7, %v44_v7  ;;  %v61_v11 = vmul.f32 %v45_v8, %v45_v8  ;;  %v46_v12 = vld [vmem:[%s157_s0 + $0x30] sm:$0xff]  ;;  %v47_v13 = vld [vmem:[%s157_s0 + $0x38] sm:$0xff] }
   0x4   :  { %v62_v14 = vmul.f32 %v46_v12, %v46_v12  ;;  %v63_v15 = vmul.f32 %v47_v13, %v47_v13  ;;  %80 = vst [vmem:[%s158_s1] sm:$0xff] %v56_v3  ;;  %81 = vst [vmem:[%s158_s1 + $0x8] sm:$0xff] %v57_v4 }
   0x5   :  { %82 = vst [vmem:[%s158_s1 + $0x10] sm:$0xff] %v58_v5  ;;  %83 = vst [vmem:[%s158_s1 + $0x18] sm:$0xff] %v59_v9 }
   0x6   :  { %84 = vst [vmem:[%s158_s1 + $0x20] sm:$0xff] %v60_v10  ;;  %85 = vst [vmem:[%s158_s1 + $0x28] sm:$0xff] %v61_v11 }
   0x7   :  { %86 = vst [vmem:[%s158_s1 + $0x30] sm:$0xff] %v62_v14  ;;  %87 = vst [vmem:[%s158_s1 + $0x38] sm:$0xff] %v63_v15 }

</bundles_post_ra>
